<compile_context>
chip_gen: v5e
topology: v5e:2x2
jax: 0.10.0
libtpu: 0.0.40
codegen_flags: <defaults>
</compile_context>

<pallas_src>
import functools

import jax
import jax.numpy as jnp
from jax.experimental import pallas as pl
from jax.experimental.pallas import tpu as pltpu

D_IN, H, D_OUT = 768, 50, 2      # original module dims
HP, OP = 128, 128                # lane-padded hidden / output dims


def _round_up(x, m):
    return (x + m - 1) // m * m


def _make_classifier_kernel(tb):
    def kernel(cls_ids_ref,                    # scalar prefetch (SMEM), [B_pad]
               embed_hbm,                      # ANY/HBM ref, [vocab, D_IN]
               mask_ref,                       # [tb, 1] f32  (CLS attention mask)
               w1_ref,                         # [D_IN, HP] bf16 (zero-padded)
               b1_ref,                         # [1, HP]   f32
               w2_ref,                         # [HP, OP]  f32 (zero-padded)
               b2_ref,                         # [1, OP]   f32
               o_ref,                          # [tb, OP]  f32
               xbuf,                           # VMEM scratch [tb, D_IN] f32
               sem):                           # scalar DMA semaphore
        base = pl.program_id(0) * tb

        # Gather the tb CLS embedding rows for this batch tile: HBM -> VMEM.
        @pl.loop(0, tb)
        def _start(r):
            idx = cls_ids_ref[base + r]
            pltpu.make_async_copy(
                embed_hbm.at[pl.ds(idx, 1), :],
                xbuf.at[pl.ds(r, 1), :],
                sem,
            ).start()

        @pl.loop(0, tb)
        def _wait(r):
            pltpu.make_async_copy(
                embed_hbm.at[pl.ds(0, 1), :],
                xbuf.at[pl.ds(r, 1), :],
                sem,
            ).wait()

        # Masked CLS hidden state (same semantics as the synthetic-BERT stand-in).
        x = xbuf[...] * mask_ref[...]                       # f32 [tb, D_IN]

        # Linear(768, 50) zero-padded to 128: bf16 MXU inputs, f32 accumulate.
        h = jnp.dot(x.astype(w1_ref.dtype), w1_ref[...],
                    preferred_element_type=jnp.float32) + b1_ref[...]
        h = jnp.maximum(h, 0.0)                             # f32 ReLU (v5e-safe)

        # Linear(50, 2) zero-padded to (128, 128): lane-dense output store.
        y = jnp.dot(h, w2_ref[...],
                    preferred_element_type=jnp.float32) + b2_ref[...]
        o_ref[...] = y

    return kernel


def pallas_classifier(cls_ids, mask_cls, embed, w1p, b1p, w2p, b2p, *, tb=512):
    """cls_ids: [B] int32, mask_cls: [B, 1] f32, embed: [vocab, D_IN] f32."""
    B = cls_ids.shape[0]
    tb_eff = min(tb, _round_up(B, 8))            # batch tile, multiple of 8
    b_pad = _round_up(B, tb_eff)
    if b_pad != B:
        cls_ids = jnp.pad(cls_ids, (0, b_pad - B))            # index 0, masked out
        mask_cls = jnp.pad(mask_cls, ((0, b_pad - B), (0, 0)))
    grid = (b_pad // tb_eff,)

    out = pl.pallas_call(
        _make_classifier_kernel(tb_eff),
        out_shape=jax.ShapeDtypeStruct((b_pad, OP), jnp.float32),
        grid_spec=pltpu.PrefetchScalarGridSpec(
            num_scalar_prefetch=1,
            grid=grid,
            in_specs=[
                pl.BlockSpec(memory_space=pl.ANY),                 # embed table (HBM)
                pl.BlockSpec((tb_eff, 1), lambda i, ids: (i, 0)),  # CLS mask
                pl.BlockSpec((D_IN, HP), lambda i, ids: (0, 0)),   # w1 (bf16, resident)
                pl.BlockSpec((1, HP), lambda i, ids: (0, 0)),      # b1
                pl.BlockSpec((HP, OP), lambda i, ids: (0, 0)),     # w2 (resident)
                pl.BlockSpec((1, OP), lambda i, ids: (0, 0)),      # b2
            ],
            out_specs=pl.BlockSpec((tb_eff, OP), lambda i, ids: (i, 0)),
            scratch_shapes=[
                pltpu.VMEM((tb_eff, D_IN), jnp.float32),           # gathered x tile
                pltpu.SemaphoreType.DMA(()),
            ],
        ),
        compiler_params=pltpu.CompilerParams(
            dimension_semantics=("parallel",),                     # 2 TCs on v7x
        ),
    )(cls_ids, embed, mask_cls, w1p, b1p, w2p, b2p)
    return out[:B, :D_OUT]


def prepare_params(embed, w1, b1, w2, b2):
    """Zero-pad H(50)->128 and D_out(2)->128 (exact), store w1 in bf16."""
    w1p = jnp.zeros((D_IN, HP), jnp.float32).at[:, :H].set(w1).astype(jnp.bfloat16)
    b1p = jnp.zeros((1, HP), jnp.float32).at[:, :H].set(b1)
    w2p = jnp.zeros((HP, OP), jnp.float32).at[:H, :D_OUT].set(w2)
    b2p = jnp.zeros((1, OP), jnp.float32).at[:, :D_OUT].set(b2)
    return {"embed": embed, "w1p": w1p, "b1p": b1p, "w2p": w2p, "b2p": b2p}


# TODO(synk): usermodel.bert is a full pretrained BertModel checkpoint; it is
# replaced by a deterministic synthetic embedding table producing the same
# [B, S, 768] last_hidden_state interface (hidden zeroed by attention_mask).
# Only the CLS position feeds the classifier, so the gather is fused into the
# Pallas kernel and the full [B, S, 768] tensor is never built. The unused
# self.model / self.model2 pretrained backbones are not instantiated.
def sub_augmented_classifier_forward(input_ids, attention_mask, params, *, tb=512):
    cls_ids = input_ids[:, 0].astype(jnp.int32)
    mask_cls = attention_mask[:, 0:1].astype(jnp.float32)
    return pallas_classifier(cls_ids, mask_cls, params["embed"],
                             params["w1p"], params["b1p"],
                             params["w2p"], params["b2p"], tb=tb)


if __name__ == "__main__":
    key = jax.random.PRNGKey(0)
    k_embed, k_w1, k_b1, k_w2, k_b2, k_ids = jax.random.split(key, 6)

    batch, seq, vocab = 2, 8, 128

    embed = jax.random.normal(k_embed, (vocab, D_IN), jnp.float32) * 0.02
    # nn.Linear stores weight [out, in]; we keep [in, out] for x @ W.
    w1 = jax.random.normal(k_w1, (D_IN, H), jnp.float32) * 0.02
    b1 = jax.random.normal(k_b1, (1, H), jnp.float32) * 0.02
    w2 = jax.random.normal(k_w2, (H, D_OUT), jnp.float32) * 0.02
    b2 = jax.random.normal(k_b2, (1, D_OUT), jnp.float32) * 0.02

    params = prepare_params(embed, w1, b1, w2, b2)

    input_ids = jax.random.randint(k_ids, (batch, seq), 0, vocab, jnp.int32)
    attention_mask = jnp.ones((batch, seq), jnp.int32)

    out = sub_augmented_classifier_forward(input_ids, attention_mask, params, tb=8)
    out = jax.block_until_ready(out)
    assert out.shape == (batch, D_OUT)

    # Reference in plain JAX, with the same mask-on-CLS semantics as forward.
    mask0 = attention_mask[:, 0:1].astype(jnp.float32)
    x_ref = embed[input_ids[:, 0]] * mask0
    y_ref = jnp.maximum(x_ref @ w1 + b1, 0.0) @ w2 + b2
    assert jnp.allclose(out, y_ref, atol=1e-3, rtol=1e-2)

    # Multi-tile path (grid > 1, padded batch) to exercise the gather pipeline.
    batch2 = 20
    ids2 = jax.random.randint(jax.random.PRNGKey(1), (batch2, seq), 0, vocab,
                              jnp.int32)
    mask2 = jnp.ones((batch2, seq), jnp.int32)
    out2 = jax.block_until_ready(
        sub_augmented_classifier_forward(ids2, mask2, params, tb=8))
    x2 = embed[ids2[:, 0]] * mask2[:, 0:1].astype(jnp.float32)
    y2 = jnp.maximum(x2 @ w1 + b1, 0.0) @ w2 + b2
    assert out2.shape == (batch2, D_OUT)
    assert jnp.allclose(out2, y2, atol=1e-3, rtol=1e-2)

    print("KERNEL_OK")
</pallas_src>

<mosaic_0001>
module attributes {stable_mosaic.version = 11 : i64} {
  func.func @kernel(%arg0: i32, %arg1: memref<8xi32, #tpu.memory_space<smem>>, %arg2: memref<128x768xf32, #tpu.memory_space<any>>, %arg3: memref<8x1xf32, #tpu.memory_space<vmem>>, %arg4: memref<768x128xbf16, #tpu.memory_space<vmem>>, %arg5: memref<1x128xf32, #tpu.memory_space<vmem>>, %arg6: memref<128x128xf32, #tpu.memory_space<vmem>>, %arg7: memref<1x128xf32, #tpu.memory_space<vmem>>, %arg8: memref<8x128xf32, #tpu.memory_space<vmem>>, %arg9: memref<8x768xf32, #tpu.memory_space<vmem>>, %arg10: memref<!tpu.dma_semaphore, #tpu.memory_space<semaphore_mem>>) attributes {dimension_semantics = [#tpu.dimension_semantics<parallel>], iteration_bounds = array<i64: 1>, scalar_prefetch = 1 : i64, scratch_operands = 2 : i64, tpu.core_type = #tpu.core_type<tc>, window_params = [{}, {transform_indices = @transform_1, window_bounds = array<i64: 8, 1>}, {pipeline_mode = #tpu.pipeline_mode<synchronous>, transform_indices = @transform_2, window_bounds = array<i64: 768, 128>}, {pipeline_mode = #tpu.pipeline_mode<synchronous>, transform_indices = @transform_3, window_bounds = array<i64: 1, 128>}, {pipeline_mode = #tpu.pipeline_mode<synchronous>, transform_indices = @transform_4, window_bounds = array<i64: 128, 128>}, {pipeline_mode = #tpu.pipeline_mode<synchronous>, transform_indices = @transform_5, window_bounds = array<i64: 1, 128>}, {transform_indices = @transform_6, window_bounds = array<i64: 8, 128>}]} {
    %c8_i32 = arith.constant 8 : i32
    %0 = arith.muli %arg0, %c8_i32 : i32
    %c0_i32 = arith.constant 0 : i32
    %c8_i32_0 = arith.constant 8 : i32
    %1 = arith.addi %c0_i32, %c8_i32_0 : i32
    %c1_i32 = arith.constant 1 : i32
    scf.for %arg11 = %c0_i32 to %1 step %c1_i32  : i32 {
      %c1_i32_21 = arith.constant 1 : i32
      %21 = arith.muli %arg11, %c1_i32_21 : i32
      %c0_i32_22 = arith.constant 0 : i32
      %22 = arith.addi %c0_i32_22, %21 : i32
      %23 = arith.addi %0, %22 : i32
      %24 = arith.index_cast %23 : i32 to index
      %25 = memref.load %arg1[%24] : memref<8xi32, #tpu.memory_space<smem>>
      %c0_i32_23 = arith.constant 0 : i32
      %26 = tpu.memref_slice %arg2[%25, %c0_i32_23] : memref<128x768xf32, #tpu.memory_space<any>> -> memref<1x768xf32, #tpu.memory_space<any>>
      %c0_i32_24 = arith.constant 0 : i32
      %27 = tpu.memref_slice %arg9[%22, %c0_i32_24] : memref<8x768xf32, #tpu.memory_space<vmem>> -> memref<1x768xf32, #tpu.memory_space<vmem>>
      tpu.enqueue_dma source(%26 : memref<1x768xf32, #tpu.memory_space<any>>) target(%27 : memref<1x768xf32, #tpu.memory_space<vmem>>) target_semaphore(%arg10 : memref<!tpu.dma_semaphore, #tpu.memory_space<semaphore_mem>>)
    }
    %c8_i32_1 = arith.constant 8 : i32
    %c0_i32_2 = arith.constant 0 : i32
    %c8_i32_3 = arith.constant 8 : i32
    %2 = arith.addi %c0_i32_2, %c8_i32_3 : i32
    %c1_i32_4 = arith.constant 1 : i32
    scf.for %arg11 = %c0_i32_2 to %2 step %c1_i32_4  : i32 {
      %c1_i32_21 = arith.constant 1 : i32
      %21 = arith.muli %arg11, %c1_i32_21 : i32
      %c0_i32_22 = arith.constant 0 : i32
      %22 = arith.addi %c0_i32_22, %21 : i32
      %c0_i32_23 = arith.constant 0 : i32
      %c0_i32_24 = arith.constant 0 : i32
      %23 = tpu.memref_slice %arg2[%c0_i32_23, %c0_i32_24] : memref<128x768xf32, #tpu.memory_space<any>> -> memref<1x768xf32, #tpu.memory_space<any>>
      %c0_i32_25 = arith.constant 0 : i32
      %24 = tpu.memref_slice %arg9[%22, %c0_i32_25] : memref<8x768xf32, #tpu.memory_space<vmem>> -> memref<1x768xf32, #tpu.memory_space<vmem>>
      tpu.wait_dma2 semaphore(%arg10 : memref<!tpu.dma_semaphore, #tpu.memory_space<semaphore_mem>>) src(%23 : memref<1x768xf32, #tpu.memory_space<any>>) dst(%24 : memref<1x768xf32, #tpu.memory_space<vmem>>)
    }
    %c8_i32_5 = arith.constant 8 : i32
    %c0 = arith.constant 0 : index
    %c0_6 = arith.constant 0 : index
    %3 = vector.load %arg9[%c0, %c0_6] : memref<8x768xf32, #tpu.memory_space<vmem>>, vector<8x768xf32>
    %c0_7 = arith.constant 0 : index
    %c0_8 = arith.constant 0 : index
    %4 = vector.load %arg3[%c0_7, %c0_8] : memref<8x1xf32, #tpu.memory_space<vmem>>, vector<8x1xf32>
    %5 = vector.broadcast %4 : vector<8x1xf32> to vector<8x768xf32>
    %6 = arith.mulf %3, %5 : vector<8x768xf32>
    %7 = arith.truncf %6 : vector<8x768xf32> to vector<8x768xbf16>
    %c0_9 = arith.constant 0 : index
    %c0_10 = arith.constant 0 : index
    %8 = vector.load %arg4[%c0_9, %c0_10] : memref<768x128xbf16, #tpu.memory_space<vmem>>, vector<768x128xbf16>
    %cst = arith.constant dense<0.000000e+00> : vector<8x128xf32>
    %9 = tpu.matmul %7, %8, %cst {dimension_numbers = #tpu.dot_dimension_numbers<[1], [0], [0], [1], [0, 0, 1, 1], [], []>} : vector<8x768xbf16>, vector<768x128xbf16>, vector<8x128xf32> -> vector<8x128xf32>
    %c0_11 = arith.constant 0 : index
    %c0_12 = arith.constant 0 : index
    %10 = vector.load %arg5[%c0_11, %c0_12] : memref<1x128xf32, #tpu.memory_space<vmem>>, vector<1x128xf32>
    %11 = vector.broadcast %10 : vector<1x128xf32> to vector<8x128xf32>
    %12 = arith.addf %9, %11 : vector<8x128xf32>
    %cst_13 = arith.constant 0.000000e+00 : f32
    %13 = vector.broadcast %cst_13 : f32 to vector<8x128xf32>
    %14 = arith.maximumf %12, %13 : vector<8x128xf32>
    %c0_14 = arith.constant 0 : index
    %c0_15 = arith.constant 0 : index
    %15 = vector.load %arg6[%c0_14, %c0_15] : memref<128x128xf32, #tpu.memory_space<vmem>>, vector<128x128xf32>
    %cst_16 = arith.constant dense<0.000000e+00> : vector<8x128xf32>
    %16 = tpu.matmul %14, %15, %cst_16 {dimension_numbers = #tpu.dot_dimension_numbers<[1], [0], [0], [1], [0, 0, 1, 1], [], []>} : vector<8x128xf32>, vector<128x128xf32>, vector<8x128xf32> -> vector<8x128xf32>
    %c0_17 = arith.constant 0 : index
    %c0_18 = arith.constant 0 : index
    %17 = vector.load %arg7[%c0_17, %c0_18] : memref<1x128xf32, #tpu.memory_space<vmem>>, vector<1x128xf32>
    %18 = vector.broadcast %17 : vector<1x128xf32> to vector<8x128xf32>
    %19 = arith.addf %16, %18 : vector<8x128xf32>
    %c0_19 = arith.constant 0 : index
    %c0_20 = arith.constant 0 : index
    %20 = vector.load %arg8[%c0_19, %c0_20] : memref<8x128xf32, #tpu.memory_space<vmem>>, vector<8x128xf32>
    tpu.vector_store %arg8[%c0_19, %c0_20], %19 {strides = array<i32>} : memref<8x128xf32, #tpu.memory_space<vmem>>, vector<8x128xf32>,
    return
  }
  func.func @transform_1(%arg0: i32, %arg1: memref<8xi32, #tpu.memory_space<smem>>) -> (i32, i32) {
    %c0_i32 = arith.constant 0 : i32
    %c0_i32_0 = arith.constant 0 : i32
    return %arg0, %c0_i32 : i32, i32
  }
  func.func @transform_2(%arg0: i32, %arg1: memref<8xi32, #tpu.memory_space<smem>>) -> (i32, i32) {
    %c0_i32 = arith.constant 0 : i32
    %c0_i32_0 = arith.constant 0 : i32
    %c0_i32_1 = arith.constant 0 : i32
    return %c0_i32, %c0_i32_0 : i32, i32
  }
  func.func @transform_3(%arg0: i32, %arg1: memref<8xi32, #tpu.memory_space<smem>>) -> (i32, i32) {
    %c0_i32 = arith.constant 0 : i32
    %c0_i32_0 = arith.constant 0 : i32
    %c0_i32_1 = arith.constant 0 : i32
    return %c0_i32, %c0_i32_0 : i32, i32
  }
  func.func @transform_4(%arg0: i32, %arg1: memref<8xi32, #tpu.memory_space<smem>>) -> (i32, i32) {
    %c0_i32 = arith.constant 0 : i32
    %c0_i32_0 = arith.constant 0 : i32
    %c0_i32_1 = arith.constant 0 : i32
    return %c0_i32, %c0_i32_0 : i32, i32
  }
  func.func @transform_5(%arg0: i32, %arg1: memref<8xi32, #tpu.memory_space<smem>>) -> (i32, i32) {
    %c0_i32 = arith.constant 0 : i32
    %c0_i32_0 = arith.constant 0 : i32
    %c0_i32_1 = arith.constant 0 : i32
    return %c0_i32, %c0_i32_0 : i32, i32
  }
  func.func @transform_6(%arg0: i32, %arg1: memref<8xi32, #tpu.memory_space<smem>>) -> (i32, i32) {
    %c0_i32 = arith.constant 0 : i32
    %c0_i32_0 = arith.constant 0 : i32
    return %arg0, %c0_i32 : i32, i32
  }
}

</mosaic_0001>

<bundles_post_ra>
// kernel: tpu_custom_call.1
= control target key start
LH: loop header
LB: loop body
LE: loop exit
PB: predicated region body
PF: predicated region fallthrough
CT: control target
= control target key end

     0   :  { %s1076_s27 = smov [#allocation5]   ;;  %s1179_s0 = inlined_call_operand.vmem [shape: s32[8], index: 0, kind: input, shape index: {}]   ;;  %s1180_s1 = inlined_call_operand.hbm [shape: f32[128,768], index: 1, kind: input, shape index: {}]   ;;  %s1181_s2 = inlined_call_operand.vmem [shape: f32[8,1], index: 2, kind: input, shape index: {}]   ;;  %s1182_s3 = inlined_call_operand.hbm [shape: bf16[768,128], index: 3, kind: input, shape index: {}]   ;;  %s1183_s4 = inlined_call_operand.vmem [shape: f32[1,128], index: 4, kind: input, shape index: {}]   ;;  %s1184_s5 = inlined_call_operand.hbm [shape: f32[128,128], index: 5, kind: input, shape index: {}]   ;;  %s1185_s6 = inlined_call_operand.vmem [shape: f32[1,128], index: 6, kind: input, shape index: {}]   ;;  %s1186_s7 = inlined_call_operand.hbm [shape: f32[8,128], index: 7, kind: output, shape index: {}]  }
   0x1   :  { %s13_s26 = sshll.u32 %s1179_s0, 4  ;;  %s14_s26 = int_to_ptr.vmem [resolvable:$true] %s13_s26 }
   0x2   :  { %16 = dma.vmem_to_smem %s14_s26, 16, %s1076_s27, [#allocation4] }
   0x3   :  { %1058 = dma.done.wait [#allocation4], 16 }
   0x4   :  { %1059 = vsyncadd [#allocation4], 4294967280 }
   0x5   :  { %19 = sfence }
   0x6   :  { %20 = vsyncpa [#allocation7], 0 }
   0x7   :  { %21 = vsyncpa [#allocation10], 0 }
   0x8   :  { %22 = vsyncpa [#allocation8], 0  ;;  %s29_s30 = sshll.u32 %s1182_s3, 4  ;;  %s1077_s8 = smov [#allocation6]   ;;  %s30_s30 = int_to_ptr.hbm [resolvable:$true] %s29_s30 }
   0x9   :  { %s31_s9 = sshll.u32 %s1077_s8, 4  ;;  %s44_s0 = sshll.u32 %s1184_s5, 4  ;;  %s32_s9 = int_to_ptr.vmem [resolvable:$true] %s31_s9  ;;  %s45_s0 = int_to_ptr.hbm [resolvable:$true] %s44_s0 }
   0xa   :  { %s1078_s12 = smov 64   ;;  %s1079_s13 = smov 4  }
   0xb   :  { %37 = dma.hbm_to_vmem [thread:$0]  %s30_s30, 6144, %s32_s9, [#allocation7], %s1078_s12, %s1078_s12, %s1079_s13  }
   0xc   :  { %s1080_s14 = smov [#allocation9]   ;;  %s1081_s16 = smov 128  }
   0xd   :  { %s46_s15 = sshll.u32 %s1080_s14, 4  ;;  %s1082_s17 = smov 8   ;;  %s47_s15 = int_to_ptr.vmem [resolvable:$true] %s46_s15 }
   0xe   :  { %52 = dma.hbm_to_vmem [thread:$0]  %s45_s0, 2048, %s47_s15, [#allocation10], %s1081_s16, %s1081_s16, %s1082_s17  }
   0xf   :  { %1060 = dma.done.wait [#allocation7], 6144  }
  0x10   :  { %1061 = vsyncadd [#allocation7], 4294961152 }
  0x11   :  { %1062 = dma.done.wait [#allocation10], 2048  }
  0x12   :  { %1063 = vsyncadd [#allocation10], 4294965248  ;;  %s1137_s3 = smov 0  }
  0x13 LB: > { %s71_s5 = sld [smem:[#allocation5 + %s1070_s3]]  ;;  %s77_s18 = sshrl.u32 %s1070_s3, 3  ;;  %s1070_s3 = sphi %s1137_s3, %s69_s3  }
  0x14   : > { %s78_s19 = sand.u32 7, %s1070_s3   ;;  %s79_s20 = smul.u32 48, %s77_s18 }
  0x15   : > { %s1006_s12 = scalar_lea.hbm %s1180_s1, 768 }
  0x16   : > { %s80_s21 = sadd.s32 %s79_s20, %s78_s19 }
  0x17   : > { %s81_s25 = scalar_lea.vmem [#allocation2], %s80_s21 }
  0x18   : > { %s1145_s26 = sshll.u32 %s81_s25, 4  ;;  %s85_s26 = int_to_ptr.vmem [resolvable:$true] %s1145_s26 }
  0x19   : > { %s72_s22 = sshrl.u32 %s71_s5, 3  ;;  %s73_s23 = sand.u32 7, %s71_s5  }
  0x1a   : > { %s74_s24 = smul.u32 48, %s72_s22 }
  0x1c   : > { %s75_s27 = sadd.s32 %s74_s24, %s73_s23 }
  0x1d   : > { %s76_s30 = scalar_lea.hbm %s1180_s1, %s75_s27 }
  0x1e   : > { %s1151_s8 = sshll.u32 %s76_s30, 4  ;;  %s83_s8 = int_to_ptr.hbm [resolvable:$true] %s1151_s8 }
  0x1f   : > { %s1002_s9 = sshra.s32 %s83_s8, 4  ;;  %s1003_s9 = int_to_ptr.hbm [resolvable:$true] %s1002_s9 }
  0x20   : > { %s1004_s10 = scalar_lea.hbm %s1003_s9, 6  ;;  %p1007_p1 = scmp.lt.s32.totalorder %s1003_s9, %s1180_s1 }
  0x21   : > { %p1005_p0 = scmp.ne.s32.totalorder %s1003_s9, %s1004_s10  ;;  %p1008_p2 = scmp.lt.s32.totalorder %s1006_s12, %s1004_s10 }
  0x23   : > { %p1009_p3 = por %p1008_p2, %p1007_p1 }
  0x25   : > { %p1010_p4 = pnand %p1009_p3, %p1005_p0 }
  0x27   : > { %1013 = shalt.err (!%p1010_p4)  }
  0x28   : > { %s1014_s15 = sshra.s32 %s85_s26, 4  ;;  %s1083_s17 = smov [#allocation2]   ;;  %s1015_s15 = int_to_ptr.vmem [resolvable:$true] %s1014_s15 }
  0x29   : > { %s1016_s16 = scalar_lea.vmem %s1015_s15, 6  ;;  %s1018_s5 = scalar_lea.vmem %s1083_s17, 48 }
  0x2a   : > { %p1017_p5 = scmp.ne.s32.totalorder %s1015_s15, %s1016_s16  ;;  %p1019_p6 = scmp.lt.s32.totalorder %s1015_s15, [#allocation2] }
  0x2b   : > { %p1020_p7 = scmp.lt.s32.totalorder %s1018_s5, %s1016_s16 }
  0x2d   : > { %p1021_p8 = por %p1020_p7, %p1019_p6 }
  0x2f   : > { %p1022_p9 = pnand %p1021_p8, %p1017_p5 }
  0x31   : > { %1025 = shalt.err (!%p1022_p9)  }
  0x32   : > { %s1084_s18 = smov 128   ;;  %s1085_s19 = smov 1  }
  0x33   : > { %89 = dma.hbm_to_vmem [thread:$0]  %s83_s8, 96, %s85_s26, [#allocation3], %s1084_s18, %s1084_s18, %s1085_s19 }
  0x34   : > { %s69_s3 = sadd.s32 1, %s1070_s3  }
  0x35   : > { %p66_p10 = scmp.ge.s32.totalorder %s69_s3, 8  }
  0x36   :  { %s1072_s20 = smov (%p66_p10), 0  }
  0x37   :  { %68 = sbr.rel (!%p66_p10) target bundleno = 19 (0x13), region = 64 }
  0x3c LB: > { %1064 = dma.done.wait [#allocation3], 96  ;;  %s1074_s20 = sphi %s1072_s20, %s95_s20  }
  0x3d   : > { %1065 = vsyncadd [#allocation3], 4294967200  ;;  %s95_s20 = sadd.s32 1, %s1074_s20  }
  0x3e   : > { %p92_p11 = scmp.ge.s32.totalorder %s95_s20, 8  }
  0x3f   :  { %v105_v0 = vld [vmem:[%s1181_s2] sm:$0xff] (%p92_p11)  ;;  %v871_v1 = vld [vmem:[#allocation6 + $0x38] sm:$0xff] (%p92_p11)  ;;  %v1086_v3 = vmov (%p92_p11), 0   ;;  %v869_v10 = vld [vmem:[#allocation6 + $0x28] sm:$0xff] (%p92_p11)  ;;  %s1087_s23 = smov (%p92_p11), [#allocation11]   ;;  %s638_s27 = sshll.u32 (%p92_p11), %s1186_s7, 4  ;;  %s639_s27 = int_to_ptr.hbm [resolvable:$true] %s638_s27 }
  0x40   :  { %94 = sbr.rel (!%p92_p11) target bundleno = 60 (0x3c), region = 75  ;;  %v879_v2 = vld [vmem:[#allocation6 + $0x78] sm:$0xff] (%p92_p11)  ;;  %939 = vset.pattern.permute.xlu0 (%p92_p11), %v1086_v3  ;;  %511 = vmatpush.bf16.msra.mxu0 (%p92_p11), %v871_v1  ;;  %v870_v4 = vld [vmem:[#allocation6 + $0x30] sm:$0xff] (%p92_p11)  ;;  %v877_v11 = vld [vmem:[#allocation6 + $0x68] sm:$0xff] (%p92_p11)  ;;  %s636_s24 = sshll.u32 (%p92_p11), %s1087_s23, 4  ;;  %s637_s24 = int_to_ptr.vmem [resolvable:$true] %s636_s24 }
  0x41   :  { %108 = vperm.xlu0 (%p92_p11), %939, %v105_v0   ;;  %524 = vmatpush.bf16.msra.mxu1 (%p92_p11), %v879_v2  ;;  %v878_v5 = vld [vmem:[#allocation6 + $0x70] sm:$0xff] (%p92_p11)  ;;  %v887_v6 = vld [vmem:[#allocation6 + $0xb8] sm:$0xff] (%p92_p11)  ;;  %v885_v12 = vld [vmem:[#allocation6 + $0xa8] sm:$0xff] (%p92_p11) }
  0x42   :  { %v895_v7 = vld [vmem:[#allocation6 + $0xf8] sm:$0xff] (%p92_p11)  ;;  %537 = vmatpush.bf16.msra.mxu2 (%p92_p11), %v887_v6  ;;  %v886_v8 = vld [vmem:[#allocation6 + $0xb0] sm:$0xff] (%p92_p11)  ;;  %v893_v13 = vld [vmem:[#allocation6 + $0xe8] sm:$0xff] (%p92_p11) }
  0x43   :  { %550 = vmatpush.bf16.msra.mxu3 (%p92_p11), %v895_v7  ;;  %v894_v9 = vld [vmem:[#allocation6 + $0xf0] sm:$0xff] (%p92_p11)  ;;  %v868_v14 = vld [vmem:[#allocation6 + $0x20] sm:$0xff] (%p92_p11)  ;;  %v867_v18 = vld [vmem:[#allocation6 + $0x18] sm:$0xff] (%p92_p11) }
  0x44   :  { %512 = vmatpush.bf16.msra.mxu0 (%p92_p11), %v870_v4  ;;  %v876_v15 = vld [vmem:[#allocation6 + $0x60] sm:$0xff] (%p92_p11)  ;;  %v875_v19 = vld [vmem:[#allocation6 + $0x58] sm:$0xff] (%p92_p11)  ;;  %v866_v22 = vld [vmem:[#allocation6 + $0x10] sm:$0xff] (%p92_p11) }
  0x45   :  { %525 = vmatpush.bf16.msra.mxu1 %v878_v5  ;;  %v884_v16 = vld [vmem:[#allocation6 + $0xa0] sm:$0xff]  ;;  %v883_v20 = vld [vmem:[#allocation6 + $0x98] sm:$0xff]  ;;  %v874_v23 = vld [vmem:[#allocation6 + $0x50] sm:$0xff] }
  0x46   :  { %538 = vmatpush.bf16.msra.mxu2 %v886_v8  ;;  %v892_v17 = vld [vmem:[#allocation6 + $0xe0] sm:$0xff]  ;;  %v891_v21 = vld [vmem:[#allocation6 + $0xd8] sm:$0xff]  ;;  %v882_v24 = vld [vmem:[#allocation6 + $0x90] sm:$0xff] }
  0x47   :  { %551 = vmatpush.bf16.msra.mxu3 %v894_v9  ;;  %v890_v25 = vld [vmem:[#allocation6 + $0xd0] sm:$0xff]  ;;  %v865_v26 = vld [vmem:[#allocation6 + $0x8] sm:$0xff]  ;;  %v864_v30 = vld [vmem:[#allocation6] sm:$0xff] }
  0x48   :  { %513 = vmatpush.bf16.msra.mxu0 %v869_v10  ;;  %v873_v27 = vld [vmem:[#allocation6 + $0x48] sm:$0xff]  ;;  %v872_v31 = vld [vmem:[#allocation6 + $0x40] sm:$0xff]  ;;  %v903_v32 = vld [vmem:[#allocation6 + $0x138] sm:$0xff] }
  0x49   :  { %526 = vmatpush.bf16.msra.mxu1 %v877_v11  ;;  %v881_v28 = vld [vmem:[#allocation6 + $0x88] sm:$0xff]  ;;  %v911_v33 = vld [vmem:[#allocation6 + $0x178] sm:$0xff]  ;;  %v902_v34 = vld [vmem:[#allocation6 + $0x130] sm:$0xff] }
  0x4a   :  { %539 = vmatpush.bf16.msra.mxu2 %v885_v12  ;;  %v889_v29 = vld [vmem:[#allocation6 + $0xc8] sm:$0xff]  ;;  %v910_v35 = vld [vmem:[#allocation6 + $0x170] sm:$0xff]  ;;  %v880_v38 = vld [vmem:[#allocation6 + $0x80] sm:$0xff] }
  0x4b   :  { %552 = vmatpush.bf16.msra.mxu3 %v893_v13  ;;  %v901_v36 = vld [vmem:[#allocation6 + $0x128] sm:$0xff]  ;;  %v888_v39 = vld [vmem:[#allocation6 + $0xc0] sm:$0xff]  ;;  %v899_v42 = vld [vmem:[#allocation6 + $0x118] sm:$0xff] }
  0x4c   :  { %514 = vmatpush.bf16.msra.mxu0 %v868_v14  ;;  %v909_v37 = vld [vmem:[#allocation6 + $0x168] sm:$0xff]  ;;  %v900_v40 = vld [vmem:[#allocation6 + $0x120] sm:$0xff]  ;;  %v907_v43 = vld [vmem:[#allocation6 + $0x158] sm:$0xff] }
  0x4d   :  { %527 = vmatpush.bf16.msra.mxu1 %v876_v15  ;;  %v908_v41 = vld [vmem:[#allocation6 + $0x160] sm:$0xff]  ;;  %v898_v44 = vld [vmem:[#allocation6 + $0x110] sm:$0xff]  ;;  %v897_v46 = vld [vmem:[#allocation6 + $0x108] sm:$0xff] }
  0x4e   :  { %540 = vmatpush.bf16.msra.mxu2 %v884_v16  ;;  %v906_v45 = vld [vmem:[#allocation6 + $0x150] sm:$0xff]  ;;  %v905_v47 = vld [vmem:[#allocation6 + $0x148] sm:$0xff]  ;;  %v896_v48 = vld [vmem:[#allocation6 + $0x100] sm:$0xff] }
  0x4f   :  { %553 = vmatpush.bf16.msra.mxu3 %v892_v17  ;;  %v904_v49 = vld [vmem:[#allocation6 + $0x140] sm:$0xff]  ;;  %v605_v50 = vld [vmem:[#allocation9 + $0x78] sm:$0xff]  ;;  %v604_v51 = vld [vmem:[#allocation9 + $0x70] sm:$0xff] }
  0x50   :  { %515 = vmatpush.bf16.msra.mxu0 %v867_v18  ;;  %v603_v52 = vld [vmem:[#allocation9 + $0x68] sm:$0xff]  ;;  %v602_v53 = vld [vmem:[#allocation9 + $0x60] sm:$0xff]  ;;  %v99_v54 = vld [vmem:[#allocation2] sm:$0xff] }
  0x51   :  { %528 = vmatpush.bf16.msra.mxu1 %v875_v19  ;;  %v100_v55 = vld [vmem:[#allocation2 + $0x8] sm:$0xff]  ;;  %v101_v56 = vld [vmem:[#allocation2 + $0x10] sm:$0xff]  ;;  %v102_v57 = vld [vmem:[#allocation2 + $0x18] sm:$0xff] }
  0x52   :  { %541 = vmatpush.bf16.msra.mxu2 %v883_v20  ;;  %v103_v3 = vld [vmem:[#allocation2 + $0x20] sm:$0xff]  ;;  %v104_v4 = vld [vmem:[#allocation2 + $0x28] sm:$0xff]  ;;  %v599_v11 = vld [vmem:[#allocation9 + $0x48] sm:$0xff] }
  0x53   :  { %554 = vmatpush.bf16.msra.mxu3 %v891_v21  ;;  %v601_v9 = vld [vmem:[#allocation9 + $0x58] sm:$0xff]  ;;  %v600_v10 = vld [vmem:[#allocation9 + $0x50] sm:$0xff]  ;;  %v598_v12 = vld [vmem:[#allocation9 + $0x40] sm:$0xff] }
  0x54   :  { %516 = vmatpush.bf16.msra.mxu0 %v866_v22  ;;  %v597_v13 = vld [vmem:[#allocation9 + $0x38] sm:$0xff]  ;;  %v596_v14 = vld [vmem:[#allocation9 + $0x30] sm:$0xff]  ;;  %v595_v15 = vld [vmem:[#allocation9 + $0x28] sm:$0xff] }
  0x55   :  { %529 = vmatpush.bf16.msra.mxu1 %v874_v23  ;;  %v594_v16 = vld [vmem:[#allocation9 + $0x20] sm:$0xff]  ;;  %v593_v17 = vld [vmem:[#allocation9 + $0x18] sm:$0xff]  ;;  %v592_v18 = vld [vmem:[#allocation9 + $0x10] sm:$0xff] }
  0x56   :  { %542 = vmatpush.bf16.msra.mxu2 %v882_v24  ;;  %v591_v19 = vld [vmem:[#allocation9 + $0x8] sm:$0xff]  ;;  %v590_v20 = vld [vmem:[#allocation9] sm:$0xff]  ;;  %v940_v23 = vld [vmem:[%s1183_s4] ss:$0 sm:$0xff] }
  0x57   :  { %555 = vmatpush.bf16.msra.mxu3 %v890_v25 }
  0x58   :  { %517 = vmatpush.bf16.msra.mxu0 %v865_v26 }
  0x59   :  { %530 = vmatpush.bf16.msra.mxu1 %v873_v27 }
  0x5a   :  { %543 = vmatpush.bf16.msra.mxu2 %v881_v28 }
  0x5b   :  { %556 = vmatpush.bf16.msra.mxu3 %v889_v29 }
  0x5c   :  { %518 = vmatpush.bf16.msra.mxu0 %v864_v30 }
  0x5d   :  { %531 = vmatpush.bf16.msra.mxu1 %v872_v31 }
  0x5e   :  { %544 = vmatpush.bf16.msra.mxu2 %v880_v38 }
  0x5f   :  { %557 = vmatpush.bf16.msra.mxu3 %v888_v39 }
  0x60   :  { %563 = vmatpush.bf16.msrb.mxu0 %v903_v32 }
  0x61   :  { %576 = vmatpush.bf16.msrb.mxu1 %v911_v33 }
  0x62   :  { %610 = vmatpush.msrb.mxu2 %v605_v50 }
  0x64   :  { %564 = vmatpush.bf16.msrb.mxu0 %v902_v34  ;;  %611 = vmatpush.msrb.mxu2 %v604_v51 }
  0x65   :  { %577 = vmatpush.bf16.msrb.mxu1 %v910_v35 }
  0x66   :  { %612 = vmatpush.msrb.mxu2 %v603_v52 }
  0x68   :  { %565 = vmatpush.bf16.msrb.mxu0 %v901_v36  ;;  %613 = vmatpush.msrb.mxu2 %v602_v53 }
  0x69   :  { %578 = vmatpush.bf16.msrb.mxu1 %v909_v37 }
  0x6a   :  { %614 = vmatpush.msrb.mxu2 %v601_v9 }
  0x6c   :  { %566 = vmatpush.bf16.msrb.mxu0 %v900_v40  ;;  %615 = vmatpush.msrb.mxu2 %v600_v10 }
  0x6d   :  { %579 = vmatpush.bf16.msrb.mxu1 %v908_v41  ;;  %v941_v41 = vld [vmem:[%s1185_s6] ss:$0 sm:$0xff] }
  0x6e   :  { %616 = vmatpush.msrb.mxu2 %v599_v11 }
  0x70   :  { %567 = vmatpush.bf16.msrb.mxu0 %v899_v42  ;;  %617 = vmatpush.msrb.mxu2 %v598_v12 }
  0x71   :  { %580 = vmatpush.bf16.msrb.mxu1 %v907_v43 }
  0x72   :  { %618 = vmatpush.msrb.mxu2 %v597_v13 }
  0x74   :  { %568 = vmatpush.bf16.msrb.mxu0 %v898_v44  ;;  %619 = vmatpush.msrb.mxu2 %v596_v14 }
  0x75   :  { %581 = vmatpush.bf16.msrb.mxu1 %v906_v45 }
  0x76   :  { %620 = vmatpush.msrb.mxu2 %v595_v15 }
  0x78   :  { %569 = vmatpush.bf16.msrb.mxu0 %v897_v46  ;;  %621 = vmatpush.msrb.mxu2 %v594_v16 }
  0x79   :  { %582 = vmatpush.bf16.msrb.mxu1 %v905_v47 }
  0x7a   :  { %622 = vmatpush.msrb.mxu2 %v593_v17 }
  0x7c   :  { %570 = vmatpush.bf16.msrb.mxu0 %v896_v48  ;;  %623 = vmatpush.msrb.mxu2 %v592_v18 }
  0x7d   :  { %583 = vmatpush.bf16.msrb.mxu1 %v904_v49 }
  0x7e   :  { %624 = vmatpush.msrb.mxu2 %v591_v19 }
  0x80   :  { %625 = vmatpush.msrb.mxu2 %v590_v20 }
  0xb3   :  { %v109_v58 = vpop.permute.xlu0 %108 }
  0xb4   :  { %v111_v59 = vmul.f32 %v109_v58, %v99_v54  ;;  %v112_v60 = vmul.f32 %v109_v58, %v100_v55  ;;  %v113_v61 = vmul.f32 %v109_v58, %v101_v56  ;;  %v114_v62 = vmul.f32 %v109_v58, %v102_v57 }
  0xb5   :  { %v115_v5 = vmul.f32 %v109_v58, %v103_v3  ;;  %v116_v6 = vmul.f32 %v109_v58, %v104_v4 }
  0xb6   :  { %v117_v63 = vpack.c.bf16 %v111_v59, %v111_v59  ;;  %v118_v0 = vpack.c.bf16 %v112_v60, %v112_v60  ;;  %v119_v1 = vpack.c.bf16 %v113_v61, %v113_v61  ;;  %v120_v2 = vpack.c.bf16 %v114_v62, %v114_v62 }
  0xb7   :  { %v121_v7 = vpack.c.bf16 %v115_v5, %v115_v5  ;;  %v122_v8 = vpack.c.bf16 %v116_v6, %v116_v6 }
  0xb8   :  { %519 = vmatmul.bf16.vlgmr.msra.gmra.mxu0 %v117_v63  ;;  %532 = vmatmul.bf16.vlgmr.msra.gmra.mxu1 %v118_v0 }
  0xb9   :  { %545 = vmatmul.bf16.vlgmr.msra.gmra.mxu2 %v119_v1  ;;  %558 = vmatmul.bf16.vlgmr.msra.gmra.mxu3 %v120_v2 }
  0xc8   :  { %571 = vmatmul.bf16.vlgmr.msrb.gmra.mxu0 %v121_v7  ;;  %584 = vmatmul.bf16.vlgmr.msrb.gmra.mxu1 %v122_v8 }
 0x135   :  { %v520_v21 = vpop.f32.mrf.mxu0  ;;  %v533_v22 = vpop.f32.mrf.mxu1 }
 0x136   :  { %v521_v24 = vadd.f32 %v940_v23, %v520_v21 }
 0x138   :  { %v534_v29 = vadd.f32 %v533_v22, %v521_v24 }
 0x13c   :  { %v546_v25 = vpop.f32.mrf.mxu2  ;;  %v559_v26 = vpop.f32.mrf.mxu3 }
 0x13d   :  { %v522_v27 = vpop.f32.mrf.mxu0  ;;  %v535_v28 = vpop.f32.mrf.mxu1  ;;  %v547_v30 = vadd.f32 %v546_v25, %v534_v29 }
 0x13f   :  { %v560_v31 = vadd.f32 %v559_v26, %v547_v30 }
 0x144   :  { %v548_v32 = vpop.f32.mrf.mxu2  ;;  %v561_v33 = vpop.f32.mrf.mxu3 }
 0x145   :  { %v572_v34 = vpop.f32.mrf.mxu0  ;;  %v585_v35 = vpop.f32.mrf.mxu1 }
 0x146   :  { %v573_v36 = vadd.f32 %v572_v34, %v560_v31 }
 0x148   :  { %v586_v37 = vadd.f32 %v585_v35, %v573_v36 }
 0x14a   :  { %v589_v38 = vmax.f32 %v586_v37, 0.0 }
 0x14c   :  { %626 = vmatmul.f32.vlgmr.msrb.gmra.mxu2 %v589_v38 }
 0x14d   :  { %v574_v39 = vpop.f32.mrf.mxu0  ;;  %v587_v40 = vpop.f32.mrf.mxu1 }
 0x1cf   :  { %v627_v42 = vpop.f32.mrf.mxu2 }
 0x1d0   :  { %v628_v43 = vadd.f32 %v941_v41, %v627_v42 }
 0x1d2   :  { %630 = vst [vmem:[#allocation11] sm:$0xff] %v628_v43 }
 0x1d3   :  { %641 = dma.vmem_to_hbm [thread:$0]  %s637_s24, 128, %s639_s27, [#allocation8]  }
 0x1d4   :  { %1066 = dma.done.wait [#allocation8], 128  }
 0x1d5   :  { %1067 = vsyncadd [#allocation8], 4294967168 }
 0x1d6   :  { %646 = vsyncpa [#allocation7], 1 }
 0x1d7   :  { %647 = vsyncpa [#allocation10], 1 }
 0x1d8   :  { %648 = vsyncpa [#allocation8], 1 }
 0x1d9   :  { %649 = vsyncmov [#allocation3] }
 0x1dc   :  { %s650_s28 = vpop.sfrf %649 }
 0x1dd   :  { %p863_p12 = scmp.ne.s32.totalorder %s650_s28, 0 }
 0x1df   :  { %654 = shalt.err (%p863_p12)  }

</bundles_post_ra>
